<compile_context>
chip_gen: v7x
topology: tpu7x:2x2x1
jax: 0.10.0
libtpu: 0.0.40
codegen_flags: <defaults>
</compile_context>

<pallas_src>
import functools

import jax
import jax.numpy as jnp
from jax import lax
from jax.experimental import pallas as pl
from jax.experimental.pallas import tpu as pltpu

_BN_EPS = 1e-5
_LANE = 128


def _round_up(x, m):
    return (x + m - 1) // m * m


def _conv_stats_kernel(w_ref, p_ref, conv_ref, sum_ref, ssq_ref):
    """One M-tile: conv(Cout, tile) = W(Cout, K) @ patches_T(K, tile) on the MXU
    (f32 accumulation).  Writes the conv tile (bf16 or f32) plus a per-tile
    lane-dense (Cout, 128) partial sum / sum-of-squares for BatchNorm."""
    acc = jnp.dot(w_ref[...], p_ref[...], preferred_element_type=jnp.float32)
    conv_ref[...] = acc.astype(conv_ref.dtype)

    # Fold the tile's M lanes down to one 128-wide f32 vector per channel with
    # exact, lane-aligned adds (zero-padded M columns / K rows contribute exact
    # zeros).  The final cross-tile / cross-chunk sum is a tiny XLA epilogue, so
    # there is no carried accumulator and the grid axis stays "parallel".
    chunks = acc.shape[1] // _LANE
    s = acc[:, 0:_LANE]
    q = s * s
    for c in range(1, chunks):
        blk = acc[:, c * _LANE:(c + 1) * _LANE]
        s = s + blk
        q = q + blk * blk
    sum_ref[...] = s
    ssq_ref[...] = q


def _bn_relu_kernel(conv_ref, scale_ref, shift_ref, out_ref):
    """Folded BatchNorm affine + ReLU on one (Cout, tile) block:
    y = max(x*scale + shift, 0); per-channel scale/shift broadcast over lanes."""
    x = conv_ref[...].astype(jnp.float32)
    out_ref[...] = jnp.maximum(x * scale_ref[...] + shift_ref[...], 0.0)


@functools.partial(jax.jit,
                   static_argnames=("stride", "padding", "tile_m", "use_bf16"))
def conv_batch_active(x_nchw, w_oihw, gamma, beta, *, stride=1, padding=1,
                      tile_m=1024, use_bf16=True):
    """Forward of Conv_Batch_Active(cin, out, kernel, stride, padding,
    bias=False, bn=True, active=True), training-mode BatchNorm."""
    N, Cin, H, W = x_nchw.shape
    Cout, Cin_w, KH, KW = w_oihw.shape
    assert Cin == Cin_w
    Hout = (H + 2 * padding - KH) // stride + 1
    Wout = (W + 2 * padding - KW) // stride + 1
    M = N * Hout * Wout
    K = KH * KW * Cin

    in_dtype = jnp.bfloat16 if use_bf16 else jnp.float32
    conv_dtype = jnp.bfloat16 if use_bf16 else jnp.float32

    # Lane-dense geometry: M (lane axis) tiles are multiples of 128; K pads only
    # to a sublane-packing multiple (16 covers both bf16 and f32).
    tile = _round_up(min(int(tile_m), _round_up(M, _LANE)), _LANE)
    M_pad = _round_up(M, tile)
    K_pad = _round_up(K, 16)
    n_tiles = M_pad // tile

    # im2col built directly in transposed (K, M) layout: K ordered (kh, kw, cin),
    # M = (n, ho, wo), zero-padded to (K_pad, M_pad).
    # TODO(synk): patches_T is still materialised in HBM (~K_pad/Cin x the raw
    # activation bytes); removing it needs element-offset overlapping input
    # windows or a manual pl.ANY DMA pipeline over (kh, kw).
    x_cnhw = jnp.transpose(x_nchw.astype(in_dtype), (1, 0, 2, 3))
    xp = jnp.pad(x_cnhw,
                 ((0, 0), (0, 0), (padding, padding), (padding, padding)))
    cols = []
    for kh in range(KH):
        for kw in range(KW):
            cols.append(xp[:, :, kh:kh + stride * Hout:stride,
                           kw:kw + stride * Wout:stride])
    patches_t = jnp.stack(cols, axis=0).reshape(K, M)
    patches_t = jnp.pad(patches_t, ((0, K_pad - K), (0, M_pad - M)))

    # OIHW -> (Cout, K) matching the (kh, kw, cin) column ordering, K zero-padded.
    w_mat = jnp.transpose(w_oihw.astype(in_dtype), (0, 2, 3, 1)).reshape(Cout, K)
    w_mat = jnp.pad(w_mat, ((0, 0), (0, K_pad - K)))

    in_bytes = jnp.dtype(in_dtype).itemsize
    conv_bytes = jnp.dtype(conv_dtype).itemsize

    # Double-buffered working set per step: 2*(K_pad*tile + Cout*tile)*bytes plus
    # two (Cout,128) stat blocks -> ~1 MiB at tile_m=1024; explicit limit stays
    # well under v7x's 32 MiB scoped / 64 MiB physical VMEM.
    params1 = pltpu.CompilerParams(
        dimension_semantics=("parallel",),   # no cross-tile carry -> v7x megacore
        vmem_limit_bytes=32 * 1024 * 1024)
    cost1 = pl.CostEstimate(
        flops=2 * Cout * K_pad * M_pad,
        transcendentals=0,
        bytes_accessed=(K_pad * M_pad * in_bytes + Cout * K_pad * in_bytes
                        + Cout * M_pad * conv_bytes
                        + 2 * Cout * n_tiles * _LANE * 4))

    conv_raw, sum_part, ssq_part = pl.pallas_call(
        _conv_stats_kernel,
        grid=(n_tiles,),
        in_specs=[
            pl.BlockSpec((Cout, K_pad), lambda i: (0, 0)),
            pl.BlockSpec((K_pad, tile), lambda i: (0, i)),
        ],
        out_specs=[
            pl.BlockSpec((Cout, tile), lambda i: (0, i)),
            pl.BlockSpec((Cout, _LANE), lambda i: (0, i)),
            pl.BlockSpec((Cout, _LANE), lambda i: (0, i)),
        ],
        out_shape=[
            jax.ShapeDtypeStruct((Cout, M_pad), conv_dtype),
            jax.ShapeDtypeStruct((Cout, n_tiles * _LANE), jnp.float32),
            jax.ShapeDtypeStruct((Cout, n_tiles * _LANE), jnp.float32),
        ],
        compiler_params=params1,
        cost_estimate=cost1,
    )(w_mat, patches_t)

    # Fold training-mode BatchNorm (biased variance, like PyTorch) into one
    # per-channel scale/shift; all stats math is f32 on exact f32 partials.
    # TODO(synk): E[x^2]-E[x]^2 can cancel for large-mean activations; a
    # compensated / two-pass variance would need an extra statistics pass.
    ch_sum = jnp.sum(sum_part, axis=1)            # (Cout,)
    ch_ssq = jnp.sum(ssq_part, axis=1)
    mean = ch_sum / float(M)
    var = jnp.maximum(ch_ssq / float(M) - mean * mean, 0.0)
    scale = gamma.astype(jnp.float32) * lax.rsqrt(var + _BN_EPS)
    shift = beta.astype(jnp.float32) - mean * scale
    scale = scale.reshape(Cout, 1)
    shift = shift.reshape(Cout, 1)

    params2 = pltpu.CompilerParams(
        dimension_semantics=("parallel",),
        vmem_limit_bytes=32 * 1024 * 1024)
    cost2 = pl.CostEstimate(
        flops=3 * Cout * M_pad, transcendentals=0,
        bytes_accessed=Cout * M_pad * (conv_bytes + 4) + 2 * Cout * 4)

    out_flat = pl.pallas_call(
        _bn_relu_kernel,
        grid=(n_tiles,),
        in_specs=[
            pl.BlockSpec((Cout, tile), lambda i: (0, i)),
            pl.BlockSpec((Cout, 1), lambda i: (0, 0)),
            pl.BlockSpec((Cout, 1), lambda i: (0, 0)),
        ],
        out_specs=pl.BlockSpec((Cout, tile), lambda i: (0, i)),
        out_shape=jax.ShapeDtypeStruct((Cout, M_pad), jnp.float32),
        compiler_params=params2,
        cost_estimate=cost2,
    )(conv_raw, scale, shift)

    # (Cout, M) is already channel-major: drop M padding (no channel padding to
    # drop), reshape, and one cheap transpose back to NCHW.
    out = out_flat[:, :M].reshape(Cout, N, Hout, Wout)
    return jnp.transpose(out, (1, 0, 2, 3))


def _reference(x_nchw, w_oihw, gamma, beta, *, stride=1, padding=1):
    """Pure-JAX reference mirroring the PyTorch forward (training-mode BN)."""
    conv = lax.conv_general_dilated(
        x_nchw, w_oihw, window_strides=(stride, stride),
        padding=[(padding, padding), (padding, padding)],
        dimension_numbers=("NCHW", "OIHW", "NCHW"))
    mean = jnp.mean(conv, axis=(0, 2, 3), keepdims=True)
    var = jnp.mean((conv - mean) ** 2, axis=(0, 2, 3), keepdims=True)
    y = (conv - mean) * lax.rsqrt(var + _BN_EPS)
    y = y * gamma.reshape(1, -1, 1, 1) + beta.reshape(1, -1, 1, 1)
    return jnp.maximum(y, 0.0)


if __name__ == "__main__":
    # Module config: Conv_Batch_Active(cin=4, out=8, kernel=3, stride=1,
    #                                  padding=1, bias=False, bn=True, active=True)
    N, Cin, H, W = 2, 4, 16, 16
    Cout, Kk = 8, 3

    key = jax.random.PRNGKey(0)
    kx, kw, kg, kb = jax.random.split(key, 4)
    x = jax.random.normal(kx, (N, Cin, H, W), dtype=jnp.float32)
    weight = jax.random.normal(kw, (Cout, Cin, Kk, Kk), dtype=jnp.float32) * (
        2.0 / (Cin * Kk * Kk)) ** 0.5
    gamma = 1.0 + 0.1 * jax.random.normal(kg, (Cout,), dtype=jnp.float32)
    beta = 0.1 * jax.random.normal(kb, (Cout,), dtype=jnp.float32)

    ref = _reference(x, weight, gamma, beta, stride=1, padding=1)

    # Primary run: bf16 MXU operands + bf16 conv intermediate.  M=512 at this
    # demo shape, so tile_m=256 gives 2 M-tiles and exercises the cross-tile
    # BatchNorm-statistics path (for realistic M the default tile_m=1024
    # amortises the ~0.35us per-grid-step overhead).
    out = conv_batch_active(x, weight, gamma, beta, stride=1, padding=1,
                            tile_m=256, use_bf16=True)
    out = jax.block_until_ready(out)
    assert out.shape == (N, Cout, H, W), out.shape
    # bf16 operand + bf16 intermediate rounding (~2^-9 relative) dominates.
    assert jnp.allclose(out, ref, atol=5e-2, rtol=5e-2), (
        float(jnp.max(jnp.abs(out - ref))))

    # f32 run (4 M-tiles): tight check that the tiled conv + global-stats BN +
    # ReLU pipeline is numerically exact.
    out32 = conv_batch_active(x, weight, gamma, beta, stride=1, padding=1,
                              tile_m=128, use_bf16=False)
    out32 = jax.block_until_ready(out32)
    assert jnp.allclose(out32, ref, atol=1e-4, rtol=1e-4), (
        float(jnp.max(jnp.abs(out32 - ref))))

    # TODO(synk): BatchNorm2d running_mean/running_var buffer updates are a
    # training-time side effect that does not affect this forward; not emitted.
    print("KERNEL_OK")
</pallas_src>

<mosaic_0001>
module attributes {stable_mosaic.version = 11 : i64} {
  func.func @_conv_stats_kernel(%arg0: i32, %arg1: memref<8x48xbf16, #tpu.memory_space<vmem>>, %arg2: memref<48x256xbf16, #tpu.memory_space<vmem>>, %arg3: memref<8x256xbf16, #tpu.memory_space<vmem>>, %arg4: memref<8x128xf32, #tpu.memory_space<vmem>>, %arg5: memref<8x128xf32, #tpu.memory_space<vmem>>) attributes {dimension_semantics = [#tpu.dimension_semantics<parallel>], iteration_bounds = array<i64: 2>, scalar_prefetch = 0 : i64, scratch_operands = 0 : i64, tpu.core_type = #tpu.core_type<tc>, window_params = [{pipeline_mode = #tpu.pipeline_mode<synchronous>, transform_indices = @transform_0, window_bounds = array<i64: 8, 48>}, {transform_indices = @transform_1, window_bounds = array<i64: 48, 256>}, {transform_indices = @transform_2, window_bounds = array<i64: 8, 256>}, {transform_indices = @transform_3, window_bounds = array<i64: 8, 128>}, {transform_indices = @transform_4, window_bounds = array<i64: 8, 128>}]} {
    %c0 = arith.constant 0 : index
    %c0_0 = arith.constant 0 : index
    %0 = vector.load %arg1[%c0, %c0_0] : memref<8x48xbf16, #tpu.memory_space<vmem>>, vector<8x48xbf16>
    %c0_1 = arith.constant 0 : index
    %c0_2 = arith.constant 0 : index
    %1 = vector.load %arg2[%c0_1, %c0_2] : memref<48x256xbf16, #tpu.memory_space<vmem>>, vector<48x256xbf16>
    %cst = arith.constant dense<0.000000e+00> : vector<8x256xf32>
    %2 = tpu.matmul %0, %1, %cst {dimension_numbers = #tpu.dot_dimension_numbers<[1], [0], [0], [1], [0, 0, 1, 1], [], []>} : vector<8x48xbf16>, vector<48x256xbf16>, vector<8x256xf32> -> vector<8x256xf32>
    %3 = arith.truncf %2 : vector<8x256xf32> to vector<8x256xbf16>
    %c0_3 = arith.constant 0 : index
    %c0_4 = arith.constant 0 : index
    %4 = vector.load %arg3[%c0_3, %c0_4] : memref<8x256xbf16, #tpu.memory_space<vmem>>, vector<8x256xbf16>
    tpu.vector_store %arg3[%c0_3, %c0_4], %3 {strides = array<i32>} : memref<8x256xbf16, #tpu.memory_space<vmem>>, vector<8x256xbf16>,
    %5 = vector.extract_strided_slice %2 {offsets = [0, 0], sizes = [8, 128], strides = [1, 1]} : vector<8x256xf32> to vector<8x128xf32>
    %6 = arith.mulf %5, %5 : vector<8x128xf32>
    %7 = vector.extract_strided_slice %2 {offsets = [0, 128], sizes = [8, 128], strides = [1, 1]} : vector<8x256xf32> to vector<8x128xf32>
    %8 = arith.addf %5, %7 : vector<8x128xf32>
    %9 = arith.mulf %7, %7 : vector<8x128xf32>
    %10 = arith.addf %6, %9 : vector<8x128xf32>
    %c0_5 = arith.constant 0 : index
    %c0_6 = arith.constant 0 : index
    %11 = vector.load %arg4[%c0_5, %c0_6] : memref<8x128xf32, #tpu.memory_space<vmem>>, vector<8x128xf32>
    tpu.vector_store %arg4[%c0_5, %c0_6], %8 {strides = array<i32>} : memref<8x128xf32, #tpu.memory_space<vmem>>, vector<8x128xf32>,
    %c0_7 = arith.constant 0 : index
    %c0_8 = arith.constant 0 : index
    %12 = vector.load %arg5[%c0_7, %c0_8] : memref<8x128xf32, #tpu.memory_space<vmem>>, vector<8x128xf32>
    tpu.vector_store %arg5[%c0_7, %c0_8], %10 {strides = array<i32>} : memref<8x128xf32, #tpu.memory_space<vmem>>, vector<8x128xf32>,
    return
  }
  func.func @transform_0(%arg0: i32) -> (i32, i32) {
    %c0_i32 = arith.constant 0 : i32
    %c0_i32_0 = arith.constant 0 : i32
    %c0_i32_1 = arith.constant 0 : i32
    return %c0_i32, %c0_i32_0 : i32, i32
  }
  func.func @transform_1(%arg0: i32) -> (i32, i32) {
    %c0_i32 = arith.constant 0 : i32
    %c0_i32_0 = arith.constant 0 : i32
    return %c0_i32, %arg0 : i32, i32
  }
  func.func @transform_2(%arg0: i32) -> (i32, i32) {
    %c0_i32 = arith.constant 0 : i32
    %c0_i32_0 = arith.constant 0 : i32
    return %c0_i32, %arg0 : i32, i32
  }
  func.func @transform_3(%arg0: i32) -> (i32, i32) {
    %c0_i32 = arith.constant 0 : i32
    %c0_i32_0 = arith.constant 0 : i32
    return %c0_i32, %arg0 : i32, i32
  }
  func.func @transform_4(%arg0: i32) -> (i32, i32) {
    %c0_i32 = arith.constant 0 : i32
    %c0_i32_0 = arith.constant 0 : i32
    return %c0_i32, %arg0 : i32, i32
  }
}

module attributes {stable_mosaic.version = 11 : i64} {
  func.func @_bn_relu_kernel(%arg0: i32, %arg1: memref<8x256xbf16, #tpu.memory_space<vmem>>, %arg2: memref<8x1xf32, #tpu.memory_space<vmem>>, %arg3: memref<8x1xf32, #tpu.memory_space<vmem>>, %arg4: memref<8x256xf32, #tpu.memory_space<vmem>>) attributes {dimension_semantics = [#tpu.dimension_semantics<parallel>], iteration_bounds = array<i64: 2>, scalar_prefetch = 0 : i64, scratch_operands = 0 : i64, tpu.core_type = #tpu.core_type<tc>, window_params = [{transform_indices = @transform_0, window_bounds = array<i64: 8, 256>}, {pipeline_mode = #tpu.pipeline_mode<synchronous>, transform_indices = @transform_1, window_bounds = array<i64: 8, 1>}, {pipeline_mode = #tpu.pipeline_mode<synchronous>, transform_indices = @transform_2, window_bounds = array<i64: 8, 1>}, {transform_indices = @transform_3, window_bounds = array<i64: 8, 256>}]} {
    %c0 = arith.constant 0 : index
    %c0_0 = arith.constant 0 : index
    %0 = vector.load %arg1[%c0, %c0_0] : memref<8x256xbf16, #tpu.memory_space<vmem>>, vector<8x256xbf16>
    %1 = arith.extf %0 : vector<8x256xbf16> to vector<8x256xf32>
    %c0_1 = arith.constant 0 : index
    %c0_2 = arith.constant 0 : index
    %2 = vector.load %arg2[%c0_1, %c0_2] : memref<8x1xf32, #tpu.memory_space<vmem>>, vector<8x1xf32>
    %3 = vector.broadcast %2 : vector<8x1xf32> to vector<8x256xf32>
    %4 = arith.mulf %1, %3 : vector<8x256xf32>
    %c0_3 = arith.constant 0 : index
    %c0_4 = arith.constant 0 : index
    %5 = vector.load %arg3[%c0_3, %c0_4] : memref<8x1xf32, #tpu.memory_space<vmem>>, vector<8x1xf32>
    %6 = vector.broadcast %5 : vector<8x1xf32> to vector<8x256xf32>
    %7 = arith.addf %4, %6 : vector<8x256xf32>
    %cst = arith.constant 0.000000e+00 : f32
    %8 = vector.broadcast %cst : f32 to vector<8x256xf32>
    %9 = arith.maximumf %7, %8 : vector<8x256xf32>
    %c0_5 = arith.constant 0 : index
    %c0_6 = arith.constant 0 : index
    %10 = vector.load %arg4[%c0_5, %c0_6] : memref<8x256xf32, #tpu.memory_space<vmem>>, vector<8x256xf32>
    tpu.vector_store %arg4[%c0_5, %c0_6], %9 {strides = array<i32>} : memref<8x256xf32, #tpu.memory_space<vmem>>, vector<8x256xf32>,
    return
  }
  func.func @transform_0(%arg0: i32) -> (i32, i32) {
    %c0_i32 = arith.constant 0 : i32
    %c0_i32_0 = arith.constant 0 : i32
    return %c0_i32, %arg0 : i32, i32
  }
  func.func @transform_1(%arg0: i32) -> (i32, i32) {
    %c0_i32 = arith.constant 0 : i32
    %c0_i32_0 = arith.constant 0 : i32
    %c0_i32_1 = arith.constant 0 : i32
    return %c0_i32, %c0_i32_0 : i32, i32
  }
  func.func @transform_2(%arg0: i32) -> (i32, i32) {
    %c0_i32 = arith.constant 0 : i32
    %c0_i32_0 = arith.constant 0 : i32
    %c0_i32_1 = arith.constant 0 : i32
    return %c0_i32, %c0_i32_0 : i32, i32
  }
  func.func @transform_3(%arg0: i32) -> (i32, i32) {
    %c0_i32 = arith.constant 0 : i32
    %c0_i32_0 = arith.constant 0 : i32
    return %c0_i32, %arg0 : i32, i32
  }
}

</mosaic_0001>

<bundles_post_ra>
// kernel: conv_batch_active.2
= control target key start
LH: loop header
LB: loop body
LE: loop exit
PB: predicated region body
PF: predicated region fallthrough
CT: control target
= control target key end

     0   :  { %s607_s15 = smov 0   ;;  %s609_s16 = smov 0   ;;  %s671_s0 = inlined_call_operand.vmem [shape: bf16[8,48], index: 0, kind: input, shape index: {}]   ;;  %s672_s1 = inlined_call_operand.vmem [shape: bf16[48,512], index: 1, kind: input, shape index: {}]   ;;  %s673_s2 = inlined_call_operand.vmem [shape: bf16[8,512], index: 2, kind: output, shape index: {0}]   ;;  %s674_s3 = inlined_call_operand.vmem [shape: f32[8,256], index: 3, kind: output, shape index: {1}]   ;;  %s675_s4 = inlined_call_operand.vmem [shape: f32[8,256], index: 4, kind: output, shape index: {2}]  }
   0x1   :  { %s611_s17 = smov 0  }
   0x2 LB: > { %s623_s18 = sadd.s32 4294967295, %s579_s17   ;;  %s626_s19 = sadd.s32 1, %s579_s17   ;;  %s579_s17 = sphi %s611_s17, %s678_s17   ;;  %s575_s16 = sphi %s609_s16, %s677_s16   ;;  %s571_s15 = sphi %s607_s15, %s676_s15  }
   0x3   : > { %s40_s20 = ssub.s32 %s579_s17, %s626_s19  ;;  %s43_s21 = sadd.s32 1, %s575_s16 }
   0x4   : > { %p41_p0 = scmp.eq.s32.totalorder %s40_s20, 0  ;;  %p50_p1 = scmp.ne.s32.totalorder %s575_s16, %s571_s15 }
   0x5   : > { %p51_p2 = scmp.eq.s32.totalorder %s579_s17, 0  ;;  %p501_p4 = scmp.ge.s32.totalorder %s579_s17, 2 }
   0x6   : > { %s635_s22 = scalar_select %p41_p0, %s575_s16, %s43_s21  }
   0x7   : > { %p52_p3 = por %p51_p2, %p50_p1  ;;  %157 = sbr.rel (%p501_p4) target bundleno = 21 (0x15), region = 20 }
   0xe   : > { %160 = sbr.rel (!%p52_p3) target bundleno = 21 (0x15), region = 24  ;;  %s162_s23 = sand.u32 (%p52_p3), 1, %s575_s16  }
   0xf   : > { %s519_s24 = sshll.u32 (%p52_p3), %s579_s17, 3  ;;  %s521_s25 = smul.u32 (%p52_p3), 48, %s162_s23 }
  0x10   : > { %s167_s28 = scalar_lea.vmem (%p52_p3), %s672_s1, %s519_s24 }
  0x11   : > { %v205_v0 = vld [vmem:[%s167_s28] sm:$0xff] (%p52_p3)  ;;  %v207_v1 = vld [vmem:[%s167_s28 + $0x10] sm:$0xff] (%p52_p3)  ;;  %s164_s29 = scalar_lea.vmem (%p52_p3), [#allocation2], %s521_s25 }
  0x12   : > { %v209_v2 = vld [vmem:[%s167_s28 + $0x20] sm:$0xff] (%p52_p3)  ;;  %v211_v3 = vld [vmem:[%s167_s28 + $0x30] sm:$0xff] (%p52_p3)  ;;  %206 = vst [vmem:[%s164_s29] sm:$0xff] (%p52_p3), %v205_v0  ;;  %208 = vst [vmem:[%s164_s29 + $0x8] sm:$0xff] (%p52_p3), %v207_v1 }
  0x13   : > { %v213_v4 = vld [vmem:[%s167_s28 + $0x40] sm:$0xff] (%p52_p3)  ;;  %v215_v5 = vld [vmem:[%s167_s28 + $0x50] sm:$0xff] (%p52_p3)  ;;  %210 = vst [vmem:[%s164_s29 + $0x10] sm:$0xff] (%p52_p3), %v209_v2  ;;  %212 = vst [vmem:[%s164_s29 + $0x18] sm:$0xff] (%p52_p3), %v211_v3 }
  0x14   : > { %214 = vst [vmem:[%s164_s29 + $0x20] sm:$0xff] (%p52_p3), %v213_v4  ;;  %216 = vst [vmem:[%s164_s29 + $0x28] sm:$0xff] (%p52_p3), %v215_v5 }
  0x15 PF: > { %p504_p5 = scmp.ge.s32.totalorder %s579_s17, 1  ;;  %p221_p6 = scmp.lt.s32.totalorder %s579_s17, 3 }
  0x17   : > { %p222_p7 = pnand %p504_p5, %p221_p6 }
  0x18   : > { %s228_s30 = sand.u32 (!%p222_p7), 1, %s571_s15   ;;  %v581_v6 = vmov (!%p222_p7), 0   ;;  %v277_v13 = vld [vmem:[%s671_s0] sm:$0xf] (!%p222_p7)  ;;  %vm314_vm0 = vcmask (!%p222_p7), 392192   ;;  %s505_s9 = sshll.u32 (!%p222_p7), %s623_s18, 1 }
  0x19   : > { %225 = sbr.rel (%p222_p7) target bundleno = 260 (0x104), region = 62  ;;  %350 = vmatprep.mubr.bf16.mxu0 (!%p222_p7), %v581_v6  ;;  %p263_p8 = scmp.lt.s32.totalorder (!%p222_p7), %s505_s9, 3 }
  0x1a   : > { %s522_s5 = smul.u32 (!%p222_p7), 48, %s228_s30  ;;  %p268_p9 = scmp.lt.s32.totalorder (!%p222_p7), %s623_s18, 1 }
  0x1c   : > { %s230_s6 = scalar_lea.vmem (!%p222_p7), [#allocation2], %s522_s5 }
  0x1d   : > { %v548_v7 = vld [vmem:[%s230_s6 + $0x4] ss:$8 sps:$4 sm:$0xff] (!%p222_p7)   ;;  %v550_v8 = vld [vmem:[%s230_s6] ss:$8 sps:$4 sm:$0xff] (!%p222_p7)   ;;  %v551_v9 = vld [vmem:[%s230_s6 + $0x14] ss:$8 sps:$4 sm:$0xff] (!%p222_p7)  }
  0x1e   : > { %318 = vmatprep.subr.bf16.mxu0 (!%p222_p7), %v548_v7  ;;  %v553_v10 = vld [vmem:[%s230_s6 + $0x10] ss:$8 sps:$4 sm:$0xff] (!%p222_p7)   ;;  %v554_v11 = vld [vmem:[%s230_s6 + $0x24] ss:$8 sps:$4 sm:$0xff] (!%p222_p7)   ;;  %v556_v12 = vld [vmem:[%s230_s6 + $0x20] ss:$8 sps:$4 sm:$0xff] (!%p222_p7)  }
  0x1f   : > { %319 = vmatpush1.bf16.msra.mxu0 (!%p222_p7), %v550_v8 }
  0x20   : > { %320 = vmatprep.subr.bf16.mxu0 %v551_v9  ;;  %s680_s9 = smov (!%p263_p8, %s505_s9), 3  ;;  %s682_s18 = smov (!%p268_p9, %s623_s18), 1 }
  0x21   : > { %s506_s10 = sshll.u32 %s680_s9, 2  ;;  %s507_s11 = sshll.u32 %s682_s18, 3 }
  0x22   : > { %s266_s14 = scalar_lea.vmem %s673_s2, %s506_s10  ;;  %s271_s20 = scalar_lea.vmem %s674_s3, %s507_s11 }
  0x23   : > { %321 = vmatpush1.bf16.msra.mxu0 %v553_v10  ;;  %s275_s24 = scalar_lea.vmem %s675_s4, %s507_s11 }
  0x24   : > { %322 = vmatprep.subr.bf16.mxu0 %v554_v11 }
  0x27   : > { %323 = vmatpush1.bf16.msra.mxu0 %v556_v12 }
  0x2a   : > { %515 = vmatmul.mubr.msk.bf16.vlgmr.msra.gmra.mrb[0].mxu0 %vm314_vm0, %v277_v13 }
  0xfd   : > { %v352_v14 = vpop.f32.mrb[0].mxu0 }
  0xfe   : > { %v368_v15 = vmul.f32 %v352_v14, %v352_v14  ;;  %v354_v16 = vpop.f32.mrb[1].mxu0 }
  0xff   : > { %v520_v17 = vpack.c.bf16 %v354_v16, %v352_v14  ;;  %v369_v18 = vadd.f32 %v354_v16, %v352_v14  ;;  %v370_v19 = vmul.f32 %v354_v16, %v354_v16  ;;  %v356_v20 = vpop.f32.mrb[2].mxu0 }
 0x100   : > { %v357_v21 = vpop.f32.mrb[3].mxu0 }
 0x101   : > { %367 = vst [vmem:[%s266_s14] sm:$0xff] %v520_v17  ;;  %v371_v22 = vadd.f32 %v370_v19, %v368_v15  ;;  %372 = vst [vmem:[%s271_s20] sm:$0xff] %v369_v18 }
 0x103   : > { %373 = vst [vmem:[%s275_s24] sm:$0xff] %v371_v22 }
 0x104 PF: > { %p12_p10 = scmp.ge.s32.totalorder %s626_s19, 4   ;;  %s676_s15 = smov %s575_s16 }
 0x105   : > { %s677_s16 = smov %s635_s22  ;;  %s678_s17 = smov %s626_s19 }
 0x106   :  { %14 = sbr.rel (!%p12_p10) target bundleno = 2 (0x2), region = 125 }

// kernel: conv_batch_active.3
= control target key start
LH: loop header
LB: loop body
LE: loop exit
PB: predicated region body
PF: predicated region fallthrough
CT: control target
= control target key end

     0   :  { %s303_s12 = smov 0   ;;  %s326_s0 = inlined_call_operand.vmem [shape: bf16[8,512], index: 0, kind: input, shape index: {}]   ;;  %s327_s1 = inlined_call_operand.vmem [shape: f32[8,1], index: 1, kind: input, shape index: {}]   ;;  %s328_s2 = inlined_call_operand.vmem [shape: f32[8,1], index: 2, kind: input, shape index: {}]   ;;  %s329_s3 = inlined_call_operand.vmem [shape: f32[8,512], index: 3, kind: output, shape index: {}]  }
   0x1 LB: > { %s253_s13 = sadd.s32 4294967295, %s280_s12   ;;  %p257_p0 = scmp.ge.s32.totalorder %s280_s12, 1  ;;  %s280_s12 = sphi %s303_s12, %s13_s12  }
   0x2   : > { %p138_p1 = scmp.lt.s32.totalorder %s280_s12, 3 }
   0x4   : > { %p139_p2 = pnand %p257_p0, %p138_p1 }
   0x5   : > { %v177_v0 = vld [vmem:[%s327_s1] sm:$0xff] (!%p139_p2)  ;;  %v282_v1 = vmov (!%p139_p2), 0   ;;  %s258_s18 = sshll.u32 (!%p139_p2), %s253_s13, 1 }
   0x6   : > { %142 = sbr.rel (%p139_p2) target bundleno = 144 (0x90), region = 32  ;;  %273 = vset.pattern.permute.xlu0 (!%p139_p2), %v282_v1  ;;  %v185_v2 = vld [vmem:[%s328_s2] sm:$0xff] (!%p139_p2)  ;;  %p163_p3 = scmp.lt.s32.totalorder (!%p139_p2), %s258_s18, 3 }
   0x7   : > { %180 = vperm.xlu0 (!%p139_p2), %273, %v177_v0  }
   0xb   : > { %188 = vperm.xlu0 (!%p139_p2), %273, %v185_v2  }
   0xd   : > { %s331_s18 = smov (!%p163_p3, %s258_s18), 3 }
   0xe   : > { %s259_s19 = sshll.u32 %s331_s18, 2  ;;  %s261_s23 = sshll.u32 %s331_s18, 3 }
   0xf   : > { %s166_s22 = scalar_lea.vmem %s326_s0, %s259_s19  ;;  %s172_s26 = scalar_lea.vmem %s329_s3, %s261_s23 }
  0x10   : > { %v174_v3 = vld [vmem:[%s166_s22] sm:$0xff] }
  0x11   : > { %v175_v4 = vunpack.c.l.bf16 %v174_v3  ;;  %v176_v5 = vunpack.c.h.bf16 %v174_v3 }
  0x86   : > { %v181_v6 = vpop.permute.xlu0 %180 }
  0x87   : > { %v183_v7 = vmul.f32 %v181_v6, %v175_v4  ;;  %v184_v8 = vmul.f32 %v181_v6, %v176_v5 }
  0x8a   : > { %v189_v9 = vpop.permute.xlu0 %188 }
  0x8b   : > { %v191_v10 = vadd.f32 %v189_v9, %v183_v7  ;;  %v192_v11 = vadd.f32 %v189_v9, %v184_v8 }
  0x8d   : > { %v193_v12 = vmax.f32 %v191_v10, 0.0  ;;  %v194_v13 = vmax.f32 %v192_v11, 0.0 }
  0x8f   : > { %195 = vst [vmem:[%s172_s26] sm:$0xff] %v193_v12  ;;  %196 = vst [vmem:[%s172_s26 + $0x8] sm:$0xff] %v194_v13 }
  0x90 PF: > { %s13_s12 = sadd.s32 1, %s280_s12  }
  0x91   : > { %p10_p4 = scmp.ge.s32.totalorder %s13_s12, 4  }
  0x93   :  { %12 = sbr.rel (!%p10_p4) target bundleno = 1 (0x1), region = 62 }

</bundles_post_ra>
